<compile_context>
chip_gen: v5e
topology: v5e:2x2
jax: 0.10.0
libtpu: 0.0.40
codegen_flags: <defaults>
</compile_context>

<pallas_src>
import functools

import jax
import jax.numpy as jnp
from jax import lax
from jax.experimental import pallas as pl
from jax.experimental.pallas import tpu as pltpu


_LANE = 128          # vreg lane width
_CHUNK = 1024        # in-kernel lane chunk (keeps h = (H, chunk) vreg-resident)
_MAX_TILE_B = 16384  # batch lanes per grid step (large, lane-dense DMA slabs)


def _round_up(x, m):
    return ((x + m - 1) // m) * m


def _rff_kernel(xT_ref, w1_ref, b1_ref, w2_ref, b2_ref, o_ref, *, chunk, n_chunks):
    # Small operands hoisted out of the chunk loop (tiny, stay vreg-resident).
    w1 = w1_ref[...]        # (H_pad, D)
    b1 = b1_ref[...]        # (H_pad, 1)
    w2 = w2_ref[...]        # (H_pad, 1)
    b2 = b2_ref[0, 0]       # scalar from SMEM

    def body(c, carry):
        off = pl.multiple_of(c * chunk, _LANE)
        xc = xT_ref[:, pl.ds(off, chunk)]                          # (D, chunk)
        # h: (H_pad, chunk) = W1 @ X^T — single small MXU matmul, batch on lanes.
        h = jnp.dot(w1, xc, preferred_element_type=jnp.float32)
        h = jnp.tanh(h + b1)                                       # VPU add + EUP tanh
        # Second projection (out_features=1): VPU multiply + sublane reduction
        # instead of an N=1 MXU matmul; result is lane-dense (1, chunk).
        y = jnp.sum(h * w2, axis=0, keepdims=True) + b2
        o_ref[:, pl.ds(off, chunk)] = y.astype(o_ref.dtype)
        return carry

    lax.fori_loop(0, n_chunks, body, 0, unroll=True)


def rff_forward(x, w1, b1, w2, b2, *, use_pallas=None):
    """RFF forward: y = tanh(x @ w1.T + b1) @ w2.T + b2.

    x:  (B, D) float32
    w1: (H, D), b1: (H,)   -- PyTorch Linear layout (out_features, in_features)
    w2: (1, H), b2: (1,)
    returns y: (B, 1)
    """
    B, D = x.shape
    H = w1.shape[0]

    if use_pallas is None:
        use_pallas = B >= 2048
    if not use_pallas:
        # Tiny batches are pallas_call-overhead bound; let XLA fuse it.
        return jnp.tanh(x @ w1.T + b1) @ w2.T + b2

    # ---- batch tiling: large lane-dense tiles, >=2 tiles for megacore -------
    B_up = _round_up(B, _LANE)
    if B_up <= _CHUNK:
        tile_b = B_up
    else:
        tile_b = min(_MAX_TILE_B, _round_up(pl.cdiv(B_up, 2), _CHUNK))
    chunk = min(_CHUNK, tile_b)          # tile_b is a multiple of chunk by construction
    n_chunks = tile_b // chunk
    n_tiles = pl.cdiv(B, tile_b)
    B_grid = n_tiles * tile_b

    # ---- hidden dim padded to the sublane multiple (8) -----------------------
    H_pad = _round_up(H, 8)

    # Kernel layouts: batch on lanes, hidden on sublanes.
    xT = jnp.pad(x, ((0, B_grid - B), (0, 0))).T                  # (D, B_grid)
    w1_p = jnp.pad(w1, ((0, H_pad - H), (0, 0)))                  # (H_pad, D)
    b1_c = jnp.pad(b1, (0, H_pad - H)).reshape(H_pad, 1)          # (H_pad, 1)
    w2_c = jnp.pad(w2, ((0, 0), (0, H_pad - H))).T                # (H_pad, 1)
    b2_s = b2.reshape(1, 1)                                       # scalar -> SMEM

    cost = pl.CostEstimate(
        flops=2 * B_grid * D * H_pad + 3 * B_grid * H_pad + B_grid,
        transcendentals=B_grid * H_pad,
        bytes_accessed=4 * (xT.size + w1_p.size + b1_c.size + w2_c.size
                            + b2_s.size + B_grid),
    )

    kernel = functools.partial(_rff_kernel, chunk=chunk, n_chunks=n_chunks)

    out = pl.pallas_call(
        kernel,
        out_shape=jax.ShapeDtypeStruct((1, B_grid), x.dtype),
        grid=(n_tiles,),
        in_specs=[
            pl.BlockSpec((D, tile_b), lambda i: (0, i)),            # X^T batch tile
            pl.BlockSpec((H_pad, D), lambda i: (0, 0)),             # W1 (resident)
            pl.BlockSpec((H_pad, 1), lambda i: (0, 0)),             # b1 (resident)
            pl.BlockSpec((H_pad, 1), lambda i: (0, 0)),             # w2 col (resident)
            pl.BlockSpec(memory_space=pltpu.MemorySpace.SMEM),      # b2 scalar
        ],
        out_specs=pl.BlockSpec((1, tile_b), lambda i: (0, i)),      # lane-dense out
        compiler_params=pltpu.CompilerParams(
            dimension_semantics=("parallel",)),
        cost_estimate=cost,
    )(xT, w1_p, b1_c, w2_c, b2_s)

    # (1, B_grid) lane-dense slab -> (B, 1) module output.
    return out[0, :B].reshape(B, 1)


def _reference(x, w1, b1, w2, b2):
    return jnp.tanh(x @ w1.T + b1) @ w2.T + b2


if __name__ == "__main__":
    # Module hyperparameters (small, consistent with RFF(__init__)):
    num_ff = 16
    input_dim = 4
    hidden = num_ff * 2          # self.num_ff = num_ff * 2 = 32
    batch = 8

    key = jax.random.PRNGKey(0)
    kx, kw1, kb1, kw2, kb2, kx2 = jax.random.split(key, 6)

    # Deterministic synthetic parameters in the PyTorch Linear layout.
    x = jax.random.normal(kx, (batch, input_dim), dtype=jnp.float32)
    w1 = jax.random.normal(kw1, (hidden, input_dim), dtype=jnp.float32) * 0.1  # (out, in)
    b1 = jax.random.normal(kb1, (hidden,), dtype=jnp.float32) * 0.1
    w2 = jax.random.normal(kw2, (1, hidden), dtype=jnp.float32) * 0.1          # (out, in)
    b2 = jax.random.normal(kb2, (1,), dtype=jnp.float32) * 0.1

    # Tiny batch: force the Pallas path so the kernel itself is exercised.
    y = jax.block_until_ready(rff_forward(x, w1, b1, w2, b2, use_pallas=True))
    y_ref = _reference(x, w1, b1, w2, b2)
    assert y.shape == (batch, 1)
    assert jnp.allclose(y, y_ref, atol=1e-5, rtol=1e-5)

    # Larger batch: auto-selects the Pallas path, multi-tile grid (tile_b=2048,
    # 2 tiles) and multi-chunk inner loop, padded lanes sliced back off.
    batch2 = 2560
    x2 = jax.random.normal(kx2, (batch2, input_dim), dtype=jnp.float32)
    y2 = jax.block_until_ready(rff_forward(x2, w1, b1, w2, b2))
    y2_ref = _reference(x2, w1, b1, w2, b2)
    assert y2.shape == (batch2, 1)
    assert jnp.allclose(y2, y2_ref, atol=1e-5, rtol=1e-5)

    print("KERNEL_OK")
</pallas_src>

<mosaic_0001>
module attributes {stable_mosaic.version = 11 : i64} {
  func.func @_rff_kernel(%arg0: i32, %arg1: memref<4x128xf32, #tpu.memory_space<vmem>>, %arg2: memref<32x4xf32, #tpu.memory_space<vmem>>, %arg3: memref<32x1xf32, #tpu.memory_space<vmem>>, %arg4: memref<32x1xf32, #tpu.memory_space<vmem>>, %arg5: memref<1x1xf32, #tpu.memory_space<smem>>, %arg6: memref<1x128xf32, #tpu.memory_space<vmem>>) attributes {dimension_semantics = [#tpu.dimension_semantics<parallel>], iteration_bounds = array<i64: 1>, scalar_prefetch = 0 : i64, scratch_operands = 0 : i64, tpu.core_type = #tpu.core_type<tc>, window_params = [{transform_indices = @transform_0, window_bounds = array<i64: 4, 128>}, {pipeline_mode = #tpu.pipeline_mode<synchronous>, transform_indices = @transform_1, window_bounds = array<i64: 32, 4>}, {pipeline_mode = #tpu.pipeline_mode<synchronous>, transform_indices = @transform_2, window_bounds = array<i64: 32, 1>}, {pipeline_mode = #tpu.pipeline_mode<synchronous>, transform_indices = @transform_3, window_bounds = array<i64: 32, 1>}, {transform_indices = @transform_4, window_bounds = array<i64: 1, 1>}, {transform_indices = @transform_5, window_bounds = array<i64: 1, 128>}]} {
    %c0 = arith.constant 0 : index
    %c0_0 = arith.constant 0 : index
    %0 = vector.load %arg2[%c0, %c0_0] : memref<32x4xf32, #tpu.memory_space<vmem>>, vector<32x4xf32>
    %c0_1 = arith.constant 0 : index
    %c0_2 = arith.constant 0 : index
    %1 = vector.load %arg3[%c0_1, %c0_2] : memref<32x1xf32, #tpu.memory_space<vmem>>, vector<32x1xf32>
    %c0_3 = arith.constant 0 : index
    %c0_4 = arith.constant 0 : index
    %2 = vector.load %arg4[%c0_3, %c0_4] : memref<32x1xf32, #tpu.memory_space<vmem>>, vector<32x1xf32>
    %c0_5 = arith.constant 0 : index
    %c0_6 = arith.constant 0 : index
    %3 = memref.load %arg5[%c0_5, %c0_6] : memref<1x1xf32, #tpu.memory_space<smem>>
    %c0_i32 = arith.constant 0 : i32
    %c128_i32 = arith.constant 128 : i32
    %4 = arith.muli %c0_i32, %c128_i32 : i32
    %5 = tpu.assume_multiple %4, 128 : i32
    %c0_7 = arith.constant 0 : index
    %6 = arith.index_cast %5 : i32 to index
    %7 = vector.load %arg1[%c0_7, %6] : memref<4x128xf32, #tpu.memory_space<vmem>>, vector<4x128xf32>
    %cst = arith.constant dense<0.000000e+00> : vector<32x128xf32>
    %8 = tpu.matmul %0, %7, %cst {dimension_numbers = #tpu.dot_dimension_numbers<[1], [0], [0], [1], [0, 0, 1, 1], [], []>} : vector<32x4xf32>, vector<4x128xf32>, vector<32x128xf32> -> vector<32x128xf32>
    %9 = vector.broadcast %1 : vector<32x1xf32> to vector<32x128xf32>
    %10 = arith.addf %8, %9 : vector<32x128xf32>
    %11 = math.tanh %10 : vector<32x128xf32>
    %12 = vector.broadcast %2 : vector<32x1xf32> to vector<32x128xf32>
    %13 = arith.mulf %11, %12 : vector<32x128xf32>
    %cst_8 = arith.constant dense<0.000000e+00> : vector<128xf32>
    %14 = vector.multi_reduction <add>, %13, %cst_8 [0] : vector<32x128xf32> to vector<128xf32>
    %15 = vector.shape_cast %14 : vector<128xf32> to vector<1x128xf32>
    %16 = vector.broadcast %3 : f32 to vector<1x128xf32>
    %17 = arith.addf %15, %16 : vector<1x128xf32>
    %c0_9 = arith.constant 0 : index
    %18 = arith.index_cast %5 : i32 to index
    %19 = vector.load %arg6[%c0_9, %18] : memref<1x128xf32, #tpu.memory_space<vmem>>, vector<1x128xf32>
    tpu.vector_store %arg6[%c0_9, %18], %17 {strides = array<i32>} : memref<1x128xf32, #tpu.memory_space<vmem>>, vector<1x128xf32>,
    %c1_i32 = arith.constant 1 : i32
    return
  }
  func.func @transform_0(%arg0: i32) -> (i32, i32) {
    %c0_i32 = arith.constant 0 : i32
    %c0_i32_0 = arith.constant 0 : i32
    return %c0_i32, %arg0 : i32, i32
  }
  func.func @transform_1(%arg0: i32) -> (i32, i32) {
    %c0_i32 = arith.constant 0 : i32
    %c0_i32_0 = arith.constant 0 : i32
    %c0_i32_1 = arith.constant 0 : i32
    return %c0_i32, %c0_i32_0 : i32, i32
  }
  func.func @transform_2(%arg0: i32) -> (i32, i32) {
    %c0_i32 = arith.constant 0 : i32
    %c0_i32_0 = arith.constant 0 : i32
    %c0_i32_1 = arith.constant 0 : i32
    return %c0_i32, %c0_i32_0 : i32, i32
  }
  func.func @transform_3(%arg0: i32) -> (i32, i32) {
    %c0_i32 = arith.constant 0 : i32
    %c0_i32_0 = arith.constant 0 : i32
    %c0_i32_1 = arith.constant 0 : i32
    return %c0_i32, %c0_i32_0 : i32, i32
  }
  func.func @transform_4(%arg0: i32) -> (i32, i32) {
    %c0_i32 = arith.constant 0 : i32
    %c0_i32_0 = arith.constant 0 : i32
    %c0_i32_1 = arith.constant 0 : i32
    return %c0_i32, %c0_i32_0 : i32, i32
  }
  func.func @transform_5(%arg0: i32) -> (i32, i32) {
    %c0_i32 = arith.constant 0 : i32
    %c0_i32_0 = arith.constant 0 : i32
    return %c0_i32, %arg0 : i32, i32
  }
}

</mosaic_0001>

<bundles_post_ra>
// kernel: tpu_custom_call.1
= control target key start
LH: loop header
LB: loop body
LE: loop exit
PB: predicated region body
PF: predicated region fallthrough
CT: control target
= control target key end

     0   :  { %vm69_vm0 = vcmask 1043456   ;;  %v205_v1 = vmov 0   ;;  %vm56_vm1 = vcmask 31744   ;;  %s282_s0 = inlined_call_operand.vmem [shape: f32[4,128], index: 0, kind: input, shape index: {}]   ;;  %s283_s1 = inlined_call_operand.vmem [shape: f32[32,4], index: 1, kind: input, shape index: {}]   ;;  %s284_s2 = inlined_call_operand.vmem [shape: f32[32,1], index: 2, kind: input, shape index: {}]   ;;  %s285_s3 = inlined_call_operand.vmem [shape: f32[32,1], index: 3, kind: input, shape index: {}]   ;;  %s286_s4 = inlined_call_operand.<no memory space> [shape: f32[1,1], index: 4, kind: input, shape index: {}]   ;;  %s287_s5 = inlined_call_operand.hbm [shape: f32[1,128], index: 5, kind: output, shape index: {}]  }
   0x1   :  { %v35_v0 = vld [vmem:[%s282_s0] sm:$0xf]  ;;  %169 = vset.pattern.permute.xlu1 %v205_v1  ;;  %168 = vset.pattern.permute.xlu0 %v205_v1  ;;  %v28_v2 = vld [vmem:[%s284_s2 + $0x10] sm:$0xff]  ;;  %v23_v5 = vld [vmem:[%s283_s1 + $0x8] sm:$0xff] }
   0x2   :  { %v26_v3 = vld [vmem:[%s284_s2] sm:$0xff]  ;;  %158 = vmatpush.msk.msra.mxu0 %vm69_vm0, %v35_v0  ;;  %163 = vmatpush.msk.msra.mxu1 %vm69_vm0, %v35_v0  ;;  %v24_v6 = vld [vmem:[%s283_s1 + $0x10] sm:$0xff]  ;;  %v25_v7 = vld [vmem:[%s283_s1 + $0x18] sm:$0xff] }
   0x3   :  { %v22_v4 = vld [vmem:[%s283_s1] sm:$0xff]  ;;  %164 = vmatpush.msk.msra.mxu2 %vm69_vm0, %v35_v0  ;;  %165 = vmatpush.msk.msra.mxu3 %vm69_vm0, %v35_v0 }
   0x4   :  { %48 = vperm.xlu1 %169, %v28_v2   ;;  %38 = vperm.xlu0 %168, %v26_v3  }
   0x5   :  { %11 = vsyncpa [#allocation4], 0  ;;  %159 = vmatmul.msk.f32.vlgmr.msra.gmra.mxu0 %vm56_vm1, %v22_v4  ;;  %160 = vmatmul.msk.f32.vlgmr.msra.gmra.mxu1 %vm56_vm1, %v23_v5  ;;  %v30_v8 = vld [vmem:[%s285_s3] sm:$0xff]  ;;  %v29_v9 = vld [vmem:[%s284_s2 + $0x18] sm:$0xff]  ;;  %v139_v46 = vstv %s286_s4  ;;  %s206_s17 = smov [#allocation3]   ;;  %s149_s21 = sshll.u32 %s287_s5, 4  ;;  %s150_s21 = int_to_ptr.hbm [resolvable:$true] %s149_s21 }
   0x6   :  { %161 = vmatmul.msk.f32.vlgmr.msra.gmra.mxu2 %vm56_vm1, %v24_v6  ;;  %162 = vmatmul.msk.f32.vlgmr.msra.gmra.mxu3 %vm56_vm1, %v25_v7  ;;  %v27_v10 = vld [vmem:[%s284_s2 + $0x8] sm:$0xff]  ;;  %v33_v12 = vld [vmem:[%s285_s3 + $0x18] sm:$0xff]  ;;  %v32_v13 = vld [vmem:[%s285_s3 + $0x10] sm:$0xff]  ;;  %s147_s18 = sshll.u32 %s206_s17, 4  ;;  %s148_s18 = int_to_ptr.vmem [resolvable:$true] %s147_s18 }
   0x7   :  { %170 = vset.pattern.permute.xlu2 %v205_v1  ;;  %v31_v11 = vld [vmem:[%s285_s3 + $0x8] sm:$0xff] }
   0x8   :  { %108 = vperm.xlu2 %170, %v30_v8  }
   0xc   :  { %53 = vperm.xlu1 %169, %v29_v9   ;;  %43 = vperm.xlu0 %168, %v27_v10  }
  0x10   :  { %113 = vperm.xlu2 %170, %v31_v11  }
  0x14   :  { %123 = vperm.xlu1 %169, %v33_v12   ;;  %118 = vperm.xlu0 %168, %v32_v13  }
  0x62   :  { %v109_v21 = vpop.permute.xlu2 %108 }
  0x6a   :  { %v114_v29 = vpop.permute.xlu2 %113 }
  0x76   :  { %v39_v14 = vpop.permute.xlu0 %38  ;;  %v49_v15 = vpop.permute.xlu1 %48 }
  0x7e   :  { %v44_v16 = vpop.permute.xlu0 %43  ;;  %v54_v22 = vpop.permute.xlu1 %53 }
  0x82   :  { %v90_v17 = vpop.f32.mrf.mxu0  ;;  %v93_v18 = vpop.f32.mrf.mxu1 }
  0x83   :  { %v91_v19 = vadd.f32 %v90_v17, %v39_v14  ;;  %v94_v20 = vadd.f32 %v93_v18, %v44_v16 }
  0x85   :  { %171 = vtanh.f32 %v91_v19 }
  0x86   :  { %173 = vtanh.f32 %v94_v20  ;;  %v119_v33 = vpop.permute.xlu0 %118  ;;  %v124_v37 = vpop.permute.xlu1 %123 }
  0x89   :  { %v96_v23 = vpop.f32.mrf.mxu2  ;;  %v99_v24 = vpop.f32.mrf.mxu3 }
  0x8a   :  { %v97_v25 = vadd.f32 %v96_v23, %v49_v15  ;;  %v100_v26 = vadd.f32 %v99_v24, %v54_v22 }
  0x8b   :  { %v172_v27 = vpop.eup %171 }
  0x8c   :  { %v174_v28 = vpop.eup %173  ;;  %175 = vtanh.f32 %v97_v25  ;;  %v126_v30 = vmul.f32 %v172_v27, %v109_v21 }
  0x8d   :  { %177 = vtanh.f32 %v100_v26  ;;  %v127_v31 = vmul.f32 %v174_v28, %v114_v29 }
  0x8f   :  { %v130_v35 = vadd.f32 %v127_v31, %v126_v30 }
  0x92   :  { %v176_v32 = vpop.eup %175 }
  0x93   :  { %v178_v34 = vpop.eup %177  ;;  %v128_v36 = vmul.f32 %v176_v32, %v119_v33 }
  0x94   :  { %v129_v39 = vmul.f32 %v178_v34, %v124_v37 }
  0x95   :  { %v131_v38 = vadd.f32 %v130_v35, %v128_v36 }
  0x97   :  { %v132_v40 = vadd.f32 %v131_v38, %v129_v39 }
  0x99   :  { %v133_v41 = vrot.slane %v132_v40, 4 }
  0x9b   :  { %v134_v42 = vadd.f32 %v133_v41, %v132_v40 }
  0x9d   :  { %v135_v43 = vrot.slane %v134_v42, 2 }
  0x9f   :  { %v136_v44 = vadd.f32 %v135_v43, %v134_v42 }
  0xa1   :  { %v137_v45 = vrot.slane %v136_v44, 1 }
  0xa3   :  { %v138_v47 = vadd.f32 %v137_v45, %v136_v44 }
  0xa5   :  { %v140_v48 = vadd.f32 %v139_v46, %v138_v47 }
  0xa7   :  { %141 = vst [vmem:[#allocation3] sm:$0x1] %v140_v48 }
  0xa8   :  { %152 = dma.vmem_to_hbm [thread:$0]  %s148_s18, 16, %s150_s21, [#allocation4]  }
  0xa9   :  { %203 = dma.done.wait [#allocation4], 16  }
  0xaa   :  { %204 = vsyncadd [#allocation4], 4294967280 }
  0xab   :  { %157 = vsyncpa [#allocation4], 1 }

</bundles_post_ra>
